<compile_context>
chip_gen: v5e
topology: v5e:2x2
jax: 0.10.0
libtpu: 0.0.40
codegen_flags: <defaults>
</compile_context>

<pallas_src>
import functools

import jax
import jax.numpy as jnp
from jax import lax
from jax.experimental import pallas as pl
from jax.experimental.pallas import tpu as pltpu


def _round_up(x, m):
    return ((x + m - 1) // m) * m


def _round_down(x, m):
    return (x // m) * m


_VMEM_LIMIT = 32 * 1024 * 1024          # explicit scoped-VMEM limit (all gens)
_DEFAULT_BLOCK_BYTES = 2 * 1024 * 1024  # ~2 MiB tiles -> near HBM roofline
_DEFAULT_FUSED_BYTES = 2 * 1024 * 1024  # single-call path when x (as f32) fits


def _lane_fold(v, fold):
    """Fold `fold` interleaved channel copies along lanes into per-channel totals.

    v: (1, P) per-lane partial sums with P = fold * C and fold a power of two.
    After log2(fold) XLU rotations every lane holds the total for its channel
    (channel = lane % C), already replicated for the packed apply pass.
    """
    if fold <= 1:
        return v
    step = v.shape[-1] // fold
    while step < v.shape[-1]:
        v = v + pltpu.roll(v, shift=step, axis=1)
        step *= 2
    return v


# --------------------------- fused single-call kernels ---------------------------

def _fused_rows_kernel(x_ref, gamma_ref, beta_ref, o_ref, *, eps, count, fold):
    """Whole (M', P) activation resident in VMEM; channels on lanes."""
    x = x_ref[...].astype(jnp.float32)
    inv_n = jnp.float32(1.0 / count)
    s1 = _lane_fold(jnp.sum(x, axis=0, keepdims=True), fold)
    s2 = _lane_fold(jnp.sum(x * x, axis=0, keepdims=True), fold)
    mean = s1 * inv_n
    var = jnp.maximum(s2 * inv_n - mean * mean, 0.0)   # biased var, clamped
    scale = gamma_ref[...] * lax.rsqrt(var + eps)       # EUP rsqrt
    shift = beta_ref[...] - mean * scale
    o_ref[...] = (x * scale + shift).astype(o_ref.dtype)


def _fused_channels_kernel(x_ref, gamma_ref, beta_ref, o_ref, *, eps, count):
    """Whole (N, C, S) activation resident in VMEM; S on lanes, C on sublanes."""
    n_batch, n_ch, _ = x_ref.shape
    s1 = jnp.zeros((n_ch, 1), jnp.float32)
    s2 = jnp.zeros((n_ch, 1), jnp.float32)
    for n in range(n_batch):                            # static unroll (small N)
        xn = x_ref[n].astype(jnp.float32)               # (C, S)
        s1 = s1 + jnp.sum(xn, axis=1, keepdims=True)
        s2 = s2 + jnp.sum(xn * xn, axis=1, keepdims=True)
    inv_n = jnp.float32(1.0 / count)
    mean = s1 * inv_n
    var = jnp.maximum(s2 * inv_n - mean * mean, 0.0)
    scale = gamma_ref[...] * lax.rsqrt(var + eps)       # (C, 1)
    shift = beta_ref[...] - mean * scale
    for n in range(n_batch):
        xn = x_ref[n].astype(jnp.float32)
        o_ref[n] = (xn * scale + shift).astype(o_ref.dtype)


# ------------------------------- tiled kernels -----------------------------------

def _stats_rows_kernel(x_ref, gamma_ref, beta_ref, scale_ref, shift_ref,
                       sum_ref, sq_ref, *, count, valid_rows, tile_rows, fold,
                       eps, mask_rows):
    """Accumulate sum / sum-sq over row tiles of (M', P); fold into scale/shift."""
    i = pl.program_id(0)

    @pl.when(i == 0)
    def _():
        sum_ref[...] = jnp.zeros_like(sum_ref)
        sq_ref[...] = jnp.zeros_like(sq_ref)

    x = x_ref[...].astype(jnp.float32)                  # (tm, P)
    if mask_rows:
        row = i * tile_rows + lax.broadcasted_iota(jnp.int32, x.shape, 0)
        x = jnp.where(row < valid_rows, x, 0.0)
    sum_ref[...] += jnp.sum(x, axis=0, keepdims=True)
    sq_ref[...] += jnp.sum(x * x, axis=0, keepdims=True)

    @pl.when(i == pl.num_programs(0) - 1)
    def _():
        inv_n = jnp.float32(1.0 / count)
        s1 = _lane_fold(sum_ref[...], fold)
        s2 = _lane_fold(sq_ref[...], fold)
        mean = s1 * inv_n
        var = jnp.maximum(s2 * inv_n - mean * mean, 0.0)
        scale = gamma_ref[...] * lax.rsqrt(var + eps)
        scale_ref[...] = scale
        shift_ref[...] = beta_ref[...] - mean * scale


def _stats_channels_kernel(x_ref, gamma_ref, beta_ref, scale_ref, shift_ref,
                           sum_ref, sq_ref, *, count, n_cols, tile_cols, eps,
                           mask_cols):
    """Accumulate per-lane partial sums over (N, S-tile) grid of (N, C, S)."""
    n, s = pl.program_id(0), pl.program_id(1)

    @pl.when((n == 0) & (s == 0))
    def _():
        sum_ref[...] = jnp.zeros_like(sum_ref)
        sq_ref[...] = jnp.zeros_like(sq_ref)

    x = x_ref[...].astype(jnp.float32)                  # (C, ts)
    if mask_cols:
        col = s * tile_cols + lax.broadcasted_iota(jnp.int32, x.shape, 1)
        x = jnp.where(col < n_cols, x, 0.0)
    sum_ref[...] += x                                    # per-lane partials (VPU only)
    sq_ref[...] += x * x

    @pl.when((n == pl.num_programs(0) - 1) & (s == pl.num_programs(1) - 1))
    def _():
        inv_n = jnp.float32(1.0 / count)
        mean = jnp.sum(sum_ref[...], axis=1, keepdims=True) * inv_n   # (C, 1)
        ex2 = jnp.sum(sq_ref[...], axis=1, keepdims=True) * inv_n
        var = jnp.maximum(ex2 - mean * mean, 0.0)
        scale = gamma_ref[...] * lax.rsqrt(var + eps)
        scale_ref[...] = scale
        shift_ref[...] = beta_ref[...] - mean * scale


def _apply_kernel(x_ref, scale_ref, shift_ref, o_ref):
    """y = x * scale + shift (per-channel broadcast); native-dtype store."""
    x = x_ref[...].astype(jnp.float32)
    o_ref[...] = (x * scale_ref[...] + shift_ref[...]).astype(o_ref.dtype)


# --------------------------------- wrappers ---------------------------------------

def _bn_over_rows(x2d, gamma, beta, *, eps, block_bytes, max_fused_bytes):
    """BatchNorm over axis 0 of an (M, C) matrix (channels on the lane axis)."""
    M, C = x2d.shape
    out_dtype = x2d.dtype

    # Lane-dense packing: view (M, C) as (M//k, k*C) with k = 128 // C so loads
    # and stores are full 128-lane vectors even for tiny channel counts.
    fold = 1
    if 0 < C < 128 and 128 % C == 0 and M % (128 // C) == 0:
        fold = 128 // C
    Mp, P = M // fold, C * fold
    xp = x2d.reshape(Mp, P)
    gp = jnp.tile(jnp.asarray(gamma, jnp.float32).reshape(1, C), (1, fold))
    bp = jnp.tile(jnp.asarray(beta, jnp.float32).reshape(1, C), (1, fold))

    # Fused single-call path: whole activation resident in VMEM.
    if xp.size * 4 <= max_fused_bytes:
        y = pl.pallas_call(
            functools.partial(_fused_rows_kernel, eps=eps, count=M, fold=fold),
            out_shape=jax.ShapeDtypeStruct((Mp, P), out_dtype),
            compiler_params=pltpu.CompilerParams(vmem_limit_bytes=_VMEM_LIMIT),
        )(xp, gp, bp)
        return y.reshape(M, C)

    itemsize = xp.dtype.itemsize
    tm = max(8, min(_round_up(Mp, 8),
                    _round_down(max(block_bytes // (P * itemsize), 8), 8)))
    n_tiles = pl.cdiv(Mp, tm)
    mask_rows = (Mp % tm) != 0

    x_spec = pl.BlockSpec((tm, P), lambda i: (i, 0))
    vec_spec = pl.BlockSpec((1, P), lambda i: (0, 0))

    # ---- pass 1: batch statistics folded into per-channel scale / shift ----
    scale, shift = pl.pallas_call(
        functools.partial(_stats_rows_kernel, count=M, valid_rows=Mp,
                          tile_rows=tm, fold=fold, eps=eps, mask_rows=mask_rows),
        out_shape=(jax.ShapeDtypeStruct((1, P), jnp.float32),
                   jax.ShapeDtypeStruct((1, P), jnp.float32)),
        grid_spec=pltpu.PrefetchScalarGridSpec(
            num_scalar_prefetch=0,
            grid=(n_tiles,),
            in_specs=[x_spec, vec_spec, vec_spec],
            out_specs=(vec_spec, vec_spec),
            scratch_shapes=[pltpu.VMEM((1, P), jnp.float32),
                            pltpu.VMEM((1, P), jnp.float32)]),
        compiler_params=pltpu.CompilerParams(
            dimension_semantics=("arbitrary",),
            vmem_limit_bytes=_VMEM_LIMIT),
    )(xp, gp, bp)

    # ---- pass 2: streaming normalize (row-parallel) ----
    y = pl.pallas_call(
        _apply_kernel,
        out_shape=jax.ShapeDtypeStruct((Mp, P), out_dtype),
        grid_spec=pltpu.PrefetchScalarGridSpec(
            num_scalar_prefetch=0,
            grid=(n_tiles,),
            in_specs=[x_spec, vec_spec, vec_spec],
            out_specs=x_spec),
        compiler_params=pltpu.CompilerParams(
            dimension_semantics=("parallel",),
            vmem_limit_bytes=_VMEM_LIMIT),
    )(xp, scale, shift)
    return y.reshape(M, C)


def _bn_over_channels(x3, gamma, beta, *, eps, block_bytes, max_fused_bytes):
    """BatchNorm over (N, spatial) of an (N, C, S) tensor (S on the lane axis)."""
    N, C, S = x3.shape
    out_dtype = x3.dtype
    g = jnp.asarray(gamma, jnp.float32).reshape(C, 1)
    b = jnp.asarray(beta, jnp.float32).reshape(C, 1)

    # Fused single-call path (static unroll over N, so keep N modest).
    if x3.size * 4 <= max_fused_bytes and N <= 256:
        return pl.pallas_call(
            functools.partial(_fused_channels_kernel, eps=eps, count=N * S),
            out_shape=jax.ShapeDtypeStruct(x3.shape, out_dtype),
            compiler_params=pltpu.CompilerParams(vmem_limit_bytes=_VMEM_LIMIT),
        )(x3, g, b)

    itemsize = x3.dtype.itemsize
    ts_cap = max(128, _round_down(max(block_bytes // (C * itemsize), 128), 128))
    ts = S if S <= ts_cap else ts_cap
    n_s = pl.cdiv(S, ts)
    mask_cols = (S % ts) != 0

    x_spec = pl.BlockSpec((pl.Squeezed(), C, ts), lambda n, s: (n, 0, s))
    vec_spec = pl.BlockSpec((C, 1), lambda n, s: (0, 0))

    # ---- pass 1: per-channel statistics -> scale / shift ----
    scale, shift = pl.pallas_call(
        functools.partial(_stats_channels_kernel, count=N * S, n_cols=S,
                          tile_cols=ts, eps=eps, mask_cols=mask_cols),
        out_shape=(jax.ShapeDtypeStruct((C, 1), jnp.float32),
                   jax.ShapeDtypeStruct((C, 1), jnp.float32)),
        grid_spec=pltpu.PrefetchScalarGridSpec(
            num_scalar_prefetch=0,
            grid=(N, n_s),
            in_specs=[x_spec, vec_spec, vec_spec],
            out_specs=(vec_spec, vec_spec),
            scratch_shapes=[pltpu.VMEM((C, ts), jnp.float32),
                            pltpu.VMEM((C, ts), jnp.float32)]),
        compiler_params=pltpu.CompilerParams(
            dimension_semantics=("arbitrary", "arbitrary"),
            vmem_limit_bytes=_VMEM_LIMIT),
    )(x3, g, b)

    # ---- pass 2: streaming normalize ----
    return pl.pallas_call(
        _apply_kernel,
        out_shape=jax.ShapeDtypeStruct(x3.shape, out_dtype),
        grid_spec=pltpu.PrefetchScalarGridSpec(
            num_scalar_prefetch=0,
            grid=(N, n_s),
            in_specs=[x_spec, vec_spec, vec_spec],
            out_specs=x_spec),
        compiler_params=pltpu.CompilerParams(
            dimension_semantics=("parallel", "parallel"),
            vmem_limit_bytes=_VMEM_LIMIT),
    )(x3, scale, shift)


def batch_norm_forward(x, gamma, beta, eps=1e-5, *,
                       block_bytes=_DEFAULT_BLOCK_BYTES,
                       max_fused_bytes=_DEFAULT_FUSED_BYTES):
    """Forward of the reference BatchNorm module (always batch statistics)."""
    if x.ndim == 2:
        return _bn_over_rows(x, gamma, beta, eps=eps, block_bytes=block_bytes,
                             max_fused_bytes=max_fused_bytes)
    assert x.ndim == 4, x.shape
    N, C, H, W = x.shape
    x3 = x.reshape(N, C, H * W)                 # contiguous view; no transpose
    y3 = _bn_over_channels(x3, gamma, beta, eps=eps, block_bytes=block_bytes,
                           max_fused_bytes=max_fused_bytes)
    return y3.reshape(N, C, H, W)


# -------------------------------- reference ---------------------------------------

def _reference(x, gamma, beta, eps=1e-5):
    xf = x.astype(jnp.float32)
    if x.ndim == 2:
        mean = xf.mean(axis=0)
        var = ((xf - mean) ** 2).mean(axis=0)
        return gamma * (xf - mean) / jnp.sqrt(var + eps) + beta
    mean = xf.mean(axis=(0, 2, 3), keepdims=True)
    var = ((xf - mean) ** 2).mean(axis=(0, 2, 3), keepdims=True)
    g = gamma.reshape(1, -1, 1, 1)
    b = beta.reshape(1, -1, 1, 1)
    return g * (xf - mean) / jnp.sqrt(var + eps) + b


# ----------------------------------- main ------------------------------------------

if __name__ == "__main__":
    key = jax.random.PRNGKey(0)
    k1, k2, k3, k4, k5, k6 = jax.random.split(key, 6)

    # 4-D: BatchNorm(num_features=4, num_dims=4), module-default affine params.
    C4 = 4
    x4 = jax.random.normal(k1, (2, C4, 16, 16), jnp.float32)
    gamma4 = jnp.ones((C4,), jnp.float32)
    beta4 = jnp.zeros((C4,), jnp.float32)
    y4 = jax.jit(batch_norm_forward)(x4, gamma4, beta4)
    jax.block_until_ready(y4)
    assert y4.shape == x4.shape and y4.dtype == x4.dtype
    ref4 = _reference(x4, gamma4, beta4)
    assert jnp.allclose(y4, ref4, atol=1e-4, rtol=1e-4), float(jnp.max(jnp.abs(y4 - ref4)))

    # 2-D: BatchNorm(num_features=32, num_dims=2), non-trivial gamma/beta.
    C2 = 32
    x2 = jax.random.normal(k2, (8, C2), jnp.float32)
    gamma2 = 1.0 + 0.1 * jax.random.normal(k3, (C2,), jnp.float32)
    beta2 = 0.1 * jax.random.normal(k4, (C2,), jnp.float32)
    y2 = jax.jit(batch_norm_forward)(x2, gamma2, beta2)
    jax.block_until_ready(y2)
    assert y2.shape == x2.shape and y2.dtype == x2.dtype
    ref2 = _reference(x2, gamma2, beta2)
    assert jnp.allclose(y2, ref2, atol=1e-4, rtol=1e-4), float(jnp.max(jnp.abs(y2 - ref2)))

    # Exercise the tiled two-pass path (tiny tiles -> multi-step grids with masked
    # partial last blocks), same semantics.
    tiled = jax.jit(lambda a, g, b: batch_norm_forward(
        a, g, b, block_bytes=1024, max_fused_bytes=0))

    x4b = jax.random.normal(k5, (2, 8, 12, 12), jnp.float32)    # S=144 -> 128 + partial
    g8 = 1.0 + 0.05 * jax.random.normal(k3, (8,), jnp.float32)
    b8 = 0.05 * jax.random.normal(k4, (8,), jnp.float32)
    y4b = tiled(x4b, g8, b8)
    jax.block_until_ready(y4b)
    ref4b = _reference(x4b, g8, b8)
    assert jnp.allclose(y4b, ref4b, atol=1e-4, rtol=1e-4), float(jnp.max(jnp.abs(y4b - ref4b)))

    x2b = jax.random.normal(k6, (100, C2), jnp.float32)         # packed rows 25 -> 4 tiles
    y2b = tiled(x2b, gamma2, beta2)
    jax.block_until_ready(y2b)
    ref2b = _reference(x2b, gamma2, beta2)
    assert jnp.allclose(y2b, ref2b, atol=1e-4, rtol=1e-4), float(jnp.max(jnp.abs(y2b - ref2b)))

    print("KERNEL_OK")
</pallas_src>

<mosaic_0001>
module attributes {stable_mosaic.version = 11 : i64} {
  func.func @_fused_channels_kernel(%arg0: memref<2x4x256xf32, #tpu.memory_space<vmem>>, %arg1: memref<4x1xf32, #tpu.memory_space<vmem>>, %arg2: memref<4x1xf32, #tpu.memory_space<vmem>>, %arg3: memref<2x4x256xf32, #tpu.memory_space<vmem>>) attributes {dimension_semantics = [], scalar_prefetch = 0 : i64, scratch_operands = 0 : i64, tpu.core_type = #tpu.core_type<tc>} {
    %cst = arith.constant 0.000000e+00 : f32
    %0 = vector.broadcast %cst : f32 to vector<4x1xf32>
    %cst_0 = arith.constant 0.000000e+00 : f32
    %1 = vector.broadcast %cst_0 : f32 to vector<4x1xf32>
    %c0 = arith.constant 0 : index
    %c0_1 = arith.constant 0 : index
    %c0_2 = arith.constant 0 : index
    %2 = vector.load %arg0[%c0, %c0_1, %c0_2] : memref<2x4x256xf32, #tpu.memory_space<vmem>>, vector<1x4x256xf32>
    %3 = vector.shape_cast %2 : vector<1x4x256xf32> to vector<4x256xf32>
    %cst_3 = arith.constant dense<0.000000e+00> : vector<4xf32>
    %4 = vector.multi_reduction <add>, %3, %cst_3 [1] : vector<4x256xf32> to vector<4xf32>
    %5 = vector.shape_cast %4 : vector<4xf32> to vector<4x1xf32>
    %6 = arith.addf %0, %5 : vector<4x1xf32>
    %7 = arith.mulf %3, %3 : vector<4x256xf32>
    %cst_4 = arith.constant dense<0.000000e+00> : vector<4xf32>
    %8 = vector.multi_reduction <add>, %7, %cst_4 [1] : vector<4x256xf32> to vector<4xf32>
    %9 = vector.shape_cast %8 : vector<4xf32> to vector<4x1xf32>
    %10 = arith.addf %1, %9 : vector<4x1xf32>
    %c1 = arith.constant 1 : index
    %c0_5 = arith.constant 0 : index
    %c0_6 = arith.constant 0 : index
    %11 = vector.load %arg0[%c1, %c0_5, %c0_6] : memref<2x4x256xf32, #tpu.memory_space<vmem>>, vector<1x4x256xf32>
    %12 = vector.shape_cast %11 : vector<1x4x256xf32> to vector<4x256xf32>
    %cst_7 = arith.constant dense<0.000000e+00> : vector<4xf32>
    %13 = vector.multi_reduction <add>, %12, %cst_7 [1] : vector<4x256xf32> to vector<4xf32>
    %14 = vector.shape_cast %13 : vector<4xf32> to vector<4x1xf32>
    %15 = arith.addf %6, %14 : vector<4x1xf32>
    %16 = arith.mulf %12, %12 : vector<4x256xf32>
    %cst_8 = arith.constant dense<0.000000e+00> : vector<4xf32>
    %17 = vector.multi_reduction <add>, %16, %cst_8 [1] : vector<4x256xf32> to vector<4xf32>
    %18 = vector.shape_cast %17 : vector<4xf32> to vector<4x1xf32>
    %19 = arith.addf %10, %18 : vector<4x1xf32>
    %cst_9 = arith.constant 0.001953125 : f32
    %20 = vector.broadcast %cst_9 : f32 to vector<4x1xf32>
    %21 = arith.mulf %15, %20 : vector<4x1xf32>
    %cst_10 = arith.constant 0.001953125 : f32
    %22 = vector.broadcast %cst_10 : f32 to vector<4x1xf32>
    %23 = arith.mulf %19, %22 : vector<4x1xf32>
    %24 = arith.mulf %21, %21 : vector<4x1xf32>
    %25 = arith.subf %23, %24 : vector<4x1xf32>
    %cst_11 = arith.constant 0.000000e+00 : f32
    %26 = vector.broadcast %cst_11 : f32 to vector<4x1xf32>
    %27 = arith.maximumf %25, %26 : vector<4x1xf32>
    %c0_12 = arith.constant 0 : index
    %c0_13 = arith.constant 0 : index
    %28 = vector.load %arg1[%c0_12, %c0_13] : memref<4x1xf32, #tpu.memory_space<vmem>>, vector<4x1xf32>
    %cst_14 = arith.constant 9.99999974E-6 : f32
    %29 = vector.broadcast %cst_14 : f32 to vector<4x1xf32>
    %30 = arith.addf %27, %29 : vector<4x1xf32>
    %31 = math.rsqrt %30 : vector<4x1xf32>
    %32 = arith.mulf %28, %31 : vector<4x1xf32>
    %c0_15 = arith.constant 0 : index
    %c0_16 = arith.constant 0 : index
    %33 = vector.load %arg2[%c0_15, %c0_16] : memref<4x1xf32, #tpu.memory_space<vmem>>, vector<4x1xf32>
    %34 = arith.mulf %21, %32 : vector<4x1xf32>
    %35 = arith.subf %33, %34 : vector<4x1xf32>
    %c0_17 = arith.constant 0 : index
    %c0_18 = arith.constant 0 : index
    %c0_19 = arith.constant 0 : index
    %36 = vector.load %arg0[%c0_17, %c0_18, %c0_19] : memref<2x4x256xf32, #tpu.memory_space<vmem>>, vector<1x4x256xf32>
    %37 = vector.shape_cast %36 : vector<1x4x256xf32> to vector<4x256xf32>
    %38 = vector.broadcast %32 : vector<4x1xf32> to vector<4x256xf32>
    %39 = arith.mulf %37, %38 : vector<4x256xf32>
    %40 = vector.broadcast %35 : vector<4x1xf32> to vector<4x256xf32>
    %41 = arith.addf %39, %40 : vector<4x256xf32>
    %c0_20 = arith.constant 0 : index
    %c0_21 = arith.constant 0 : index
    %c0_22 = arith.constant 0 : index
    %42 = vector.load %arg3[%c0_20, %c0_21, %c0_22] : memref<2x4x256xf32, #tpu.memory_space<vmem>>, vector<1x4x256xf32>
    %43 = vector.shape_cast %42 : vector<1x4x256xf32> to vector<4x256xf32>
    %44 = vector.shape_cast %41 : vector<4x256xf32> to vector<1x4x256xf32>
    tpu.vector_store %arg3[%c0_20, %c0_21, %c0_22], %44 {strides = array<i32>} : memref<2x4x256xf32, #tpu.memory_space<vmem>>, vector<1x4x256xf32>,
    %c1_23 = arith.constant 1 : index
    %c0_24 = arith.constant 0 : index
    %c0_25 = arith.constant 0 : index
    %45 = vector.load %arg0[%c1_23, %c0_24, %c0_25] : memref<2x4x256xf32, #tpu.memory_space<vmem>>, vector<1x4x256xf32>
    %46 = vector.shape_cast %45 : vector<1x4x256xf32> to vector<4x256xf32>
    %47 = vector.broadcast %32 : vector<4x1xf32> to vector<4x256xf32>
    %48 = arith.mulf %46, %47 : vector<4x256xf32>
    %49 = vector.broadcast %35 : vector<4x1xf32> to vector<4x256xf32>
    %50 = arith.addf %48, %49 : vector<4x256xf32>
    %c1_26 = arith.constant 1 : index
    %c0_27 = arith.constant 0 : index
    %c0_28 = arith.constant 0 : index
    %51 = vector.load %arg3[%c1_26, %c0_27, %c0_28] : memref<2x4x256xf32, #tpu.memory_space<vmem>>, vector<1x4x256xf32>
    %52 = vector.shape_cast %51 : vector<1x4x256xf32> to vector<4x256xf32>
    %53 = vector.shape_cast %50 : vector<4x256xf32> to vector<1x4x256xf32>
    tpu.vector_store %arg3[%c1_26, %c0_27, %c0_28], %53 {strides = array<i32>} : memref<2x4x256xf32, #tpu.memory_space<vmem>>, vector<1x4x256xf32>,
    return
  }
}

</mosaic_0001>

<bundles_post_ra>
// kernel: batch_norm_forward.1
= control target key start
LH: loop header
LB: loop body
LE: loop exit
PB: predicated region body
PF: predicated region fallthrough
CT: control target
= control target key end

     0   :  { %vm21_vm0 = vcmask 1043456   ;;  %v128_v25 = vmov 0   ;;  %v129_v49 = vmov 839922192   ;;  %s188_s0 = inlined_call_operand.vmem [shape: f32[2,4,256], index: 0, kind: input, shape index: {}]   ;;  %s189_s1 = inlined_call_operand.vmem [shape: f32[4,1], index: 1, kind: input, shape index: {}]   ;;  %s190_s2 = inlined_call_operand.vmem [shape: f32[4,1], index: 2, kind: input, shape index: {}]   ;;  %s191_s3 = inlined_call_operand.vmem [shape: f32[2,4,256], index: 3, kind: output, shape index: {}]  }
   0x1   :  { %v153_v0 = vld [vmem:[%s188_s0] sm:$0xff]  ;;  %v163_v7 = vld [vmem:[%s188_s0 + $0x8] sm:$0xff]  ;;  %124 = vset.pattern.permute.xlu2 %v128_v25  ;;  %125 = vset.pattern.permute.xlu0 %v128_v25  ;;  %v94_v50 = vunpack.c.l.s4 %v129_v49 }
   0x2   :  { %16 = vst [vmem:[#allocation1] ss:$2 sm:$0xff] %v153_v0  ;;  %v28_v1 = vmul.f32 %v153_v0, %v153_v0  ;;  %v55_v13 = vmul.f32 %v163_v7, %v163_v7  ;;  %v73_v42 = vld [vmem:[%s189_s1] sm:$0xf] }
   0x3   :  { %v86_v47 = vld [vmem:[%s190_s2] sm:$0xf]  ;;  %v95_v52 = vunpack.c.0.s8 %v94_v50 }
   0x9   :  { %v17_v2 = vld.sshfl [vmem:[#allocation1] sm:$0xff pattern:$0x75316420]  ;;  %v18_v3 = vld.sshfl [vmem:[#allocation1 + $0x8] sm:$0xff pattern:$0x75316420] }
   0xa   :  { %v22_v4 = vsel %vm21_vm0, %v17_v2, 0.0  ;;  %v23_v5 = vsel %vm21_vm0, %v18_v3, 0.0  ;;  %30 = vst [vmem:[#allocation1] ss:$2 sm:$0xff] %v28_v1 }
   0xb   :  { %v24_v6 = vadd.f32 %v23_v5, %v22_v4 }
   0xd   :  { %25 = vadd.xlane.f32.xlu0 %v24_v6 }
  0x11   :  { %v31_v8 = vld.sshfl [vmem:[#allocation1] sm:$0xff pattern:$0x75316420]  ;;  %v32_v9 = vld.sshfl [vmem:[#allocation1 + $0x8] sm:$0xff pattern:$0x75316420] }
  0x12   :  { %v35_v10 = vsel %vm21_vm0, %v31_v8, 0.0  ;;  %v36_v11 = vsel %vm21_vm0, %v32_v9, 0.0  ;;  %44 = vst [vmem:[#allocation1] ss:$2 sm:$0xff] %v163_v7 }
  0x13   :  { %v37_v12 = vadd.f32 %v36_v11, %v35_v10 }
  0x15   :  { %38 = vadd.xlane.f32.xlu1 %v37_v12 }
  0x19   :  { %v45_v14 = vld.sshfl [vmem:[#allocation1] sm:$0xff pattern:$0x75316420]  ;;  %v46_v15 = vld.sshfl [vmem:[#allocation1 + $0x8] sm:$0xff pattern:$0x75316420] }
  0x1a   :  { %v49_v16 = vsel %vm21_vm0, %v45_v14, 0.0  ;;  %v50_v17 = vsel %vm21_vm0, %v46_v15, 0.0  ;;  %57 = vst [vmem:[#allocation1] ss:$2 sm:$0xff] %v55_v13 }
  0x1b   :  { %v51_v18 = vadd.f32 %v50_v17, %v49_v16 }
  0x1d   :  { %52 = vadd.xlane.f32.xlu0 %v51_v18 }
  0x21   :  { %v58_v19 = vld.sshfl [vmem:[#allocation1] sm:$0xff pattern:$0x75316420]  ;;  %v59_v20 = vld.sshfl [vmem:[#allocation1 + $0x8] sm:$0xff pattern:$0x75316420] }
  0x22   :  { %v62_v21 = vsel %vm21_vm0, %v58_v19, 0.0  ;;  %v63_v22 = vsel %vm21_vm0, %v59_v20, 0.0 }
  0x23   :  { %v64_v23 = vadd.f32 %v63_v22, %v62_v21 }
  0x25   :  { %65 = vadd.xlane.f32.xlu1 %v64_v23 }
  0x80   :  { %v26_v24 = vpop.xlane.xlu0 %25 }
  0x88   :  { %v39_v26 = vpop.xlane.xlu1 %38 }
  0x90   :  { %v53_v27 = vpop.xlane.xlu0 %52 }
  0x91   :  { %v54_v28 = vadd.f32 %v53_v27, %v26_v24 }
  0x93   :  { %v68_v29 = vmul.f32 0.001953125, %v54_v28 }
  0x95   :  { %v70_v32 = vmul.f32 %v68_v29, %v68_v29 }
  0x98   :  { %v66_v30 = vpop.xlane.xlu1 %65 }
  0x99   :  { %v67_v31 = vadd.f32 %v66_v30, %v39_v26 }
  0x9b   :  { %v69_v33 = vmul.f32 0.001953125, %v67_v31 }
  0x9d   :  { %v71_v34 = vsub.f32 %v69_v33, %v70_v32 }
  0x9f   :  { %v72_v35 = vmax.f32 %v71_v34, 0.0 }
  0xa1   :  { %v74_v36 = vadd.f32 1e-05, %v72_v35 }
  0xa3   :  { %126 = vrsqrt.f32 %v74_v36  ;;  %vm81_vm2 = vweird.f32 %v74_v36 }
  0xa9   :  { %v127_v37 = vpop.eup %126 }
  0xaa   :  { %v76_v38 = vmul.f32 %v127_v37, %v74_v36  ;;  %vm82_vm1 = vweird.f32 %v127_v37 }
  0xab   :  { %vm83_vm3 = vmor %vm81_vm2, %vm82_vm1 }
  0xac   :  { %v77_v39 = vmul.f32 %v127_v37, %v76_v38 }
  0xae   :  { %v78_v40 = vmul.f32 0.5, %v77_v39 }
  0xb0   :  { %v79_v41 = vsub.f32 1.5, %v78_v40 }
  0xb2   :  { %v80_v43 = vmul.f32 %v127_v37, %v79_v41 }
  0xb4   :  { %v84_v44 = vsel %vm83_vm3, %v127_v37, %v80_v43 }
  0xb5   :  { %v85_v45 = vmul.f32 %v84_v44, %v73_v42 }
  0xb7   :  { %91 = vperm.xlu2 %124, %v85_v45   ;;  %v87_v46 = vmul.f32 %v85_v45, %v68_v29 }
  0xb9   :  { %v88_v48 = vsub.f32 %v86_v47, %v87_v46 }
  0xbf   :  { %101 = vperm.xlu2 %124, %v88_v48  }
 0x111   :  { %v92_v51 = vpop.permute.xlu2 %91 }
 0x112   :  { %v96_v53 = vperm.slane %v92_v51, %v95_v52 }
 0x114   :  { %v98_v55 = vmul.f32 %v96_v53, %v153_v0  ;;  %v111_v56 = vmul.f32 %v163_v7, %v96_v53 }
 0x119   :  { %v102_v54 = vpop.permute.xlu2 %101 }
 0x11a   :  { %v106_v57 = vperm.slane %v102_v54, %v95_v52 }
 0x11c   :  { %v108_v58 = vadd.f32 %v106_v57, %v98_v55  ;;  %v112_v59 = vadd.f32 %v111_v56, %v106_v57 }
 0x11e   :  { %109 = vst [vmem:[%s191_s3] sm:$0xff] %v108_v58 }
 0x11f   :  { %121 = vst [vmem:[%s191_s3 + $0x8] sm:$0xff] %v112_v59 }

</bundles_post_ra>
